<compile_context>
chip_gen: v7x
topology: tpu7x:2x2x1
jax: 0.10.0
libtpu: 0.0.40
codegen_flags: <defaults>
</compile_context>

<pallas_src>
import functools

import jax
import jax.numpy as jnp
from jax.experimental import pallas as pl
from jax.experimental.pallas import tpu as pltpu


# ----------------------------------------------------------------------------
# Hardware-aware sizing helpers
# ----------------------------------------------------------------------------
def _vmem_capacity_bytes():
    try:
        info = pltpu.get_tpu_info()
        for attr in ("vmem_capacity_bytes", "vmem_size_bytes"):
            cap = getattr(info, attr, None)
            if cap:
                return int(cap)
    except Exception:
        pass
    # Conservative fallback (v7x per-TensorCore VMEM).
    return 64 * 1024 * 1024


def _round_down_mult(v, m):
    return (v // m) * m


# ----------------------------------------------------------------------------
# Shared FC helper (fc1 -> ReLU -> fc2 -> sigmoid), all in f32.
# ----------------------------------------------------------------------------
def _fc_scale(pooled, w1_ref, w2_ref, use_mxu):
    w1 = w1_ref[...].astype(jnp.float32)   # (mid, C)  fc1.weight
    w2 = w2_ref[...].astype(jnp.float32)   # (C, mid)  fc2.weight
    if use_mxu:
        # Contract over C / mid on the (otherwise idle) MXU; f32 accumulation.
        hidden = jax.lax.dot_general(
            pooled, w1, (((1,), (1,)), ((), ())),
            preferred_element_type=jnp.float32)                    # (Bt, mid)
        hidden = jnp.maximum(hidden, 0.0)
        logits = jax.lax.dot_general(
            hidden, w2, (((1,), (1,)), ((), ())),
            preferred_element_type=jnp.float32)                    # (Bt, C)
    else:
        # Tiny contractions: VPU broadcast-mul + lane reduce (avoid padding a
        # 1-row matmul to a full MXU tile).
        hidden = jnp.sum(pooled[:, None, :] * w1[None, :, :], axis=-1)
        hidden = jnp.maximum(hidden, 0.0)
        logits = jnp.sum(hidden[:, None, :] * w2[None, :, :], axis=-1)
    return jax.nn.sigmoid(logits)                                   # (Bt, C) f32


# ----------------------------------------------------------------------------
# Single-pass kernel: whole (bt, C, HW) tile resident in VMEM.
# ----------------------------------------------------------------------------
def se_kernel(x_ref, w1_ref, w2_ref, o_ref, *, inv_hw, use_mxu):
    # Global average pool over the full (unpadded) spatial axis; the block is
    # full-extent in HW, so the logical reduce is exact (no masking needed).
    pooled = jnp.sum(x_ref[...], axis=-1, dtype=jnp.float32) * inv_hw  # (Bt, C)

    scale = _fc_scale(pooled, w1_ref, w2_ref, use_mxu)                 # (Bt, C)

    # Re-read the tile from the ref for the multiply (streaming VMEM read,
    # keeps live ranges short across pool -> FC -> sigmoid).
    x = x_ref[...]
    o_ref[...] = (x * scale[:, :, None].astype(x.dtype)).astype(o_ref.dtype)


# ----------------------------------------------------------------------------
# Two-pass fallback kernels (HW tiled in the grid; bt fixed to 1).
# ----------------------------------------------------------------------------
def pool_scale_kernel(x_ref, w1_ref, w2_ref, scale_ref, acc_ref, *,
                      hw, hw_tile, inv_hw, use_mxu):
    l = pl.program_id(1)

    @pl.when(l == 0)
    def _():
        acc_ref[...] = jnp.zeros_like(acc_ref)

    x = x_ref[...]                                          # (1, C, hw_tile)
    if hw % hw_tile != 0:
        # Mask the ragged tail: VMEM tile padding is not guaranteed zero.
        idx = jax.lax.broadcasted_iota(jnp.int32, x.shape, 2) + l * hw_tile
        x = jnp.where(idx < hw, x, jnp.zeros_like(x))
    acc_ref[...] += jnp.sum(x, axis=-1, dtype=jnp.float32)  # (1, C)

    @pl.when(l == pl.num_programs(1) - 1)
    def _():
        pooled = acc_ref[...] * inv_hw                      # (1, C)
        scale = _fc_scale(pooled, w1_ref, w2_ref, use_mxu)  # (1, C)
        scale_ref[...] = scale[:, None, :].astype(scale_ref.dtype)  # (1,1,C)


def apply_scale_kernel(scale_ref, x_ref, o_ref):
    x = x_ref[...]                                          # (1, C, hw_tile)
    s = scale_ref[...]                                      # (1, 1, C)
    o_ref[...] = (x * s[:, 0, :, None].astype(x.dtype)).astype(o_ref.dtype)


# ----------------------------------------------------------------------------
# Wrapper
# ----------------------------------------------------------------------------
def spatial_attention(x, w1, w2, *, force_two_pass=False):
    """x: (B, C, H, W); w1: (mid, C) = fc1.weight; w2: (C, mid) = fc2.weight."""
    B, C, H, W = x.shape
    mid = w1.shape[0]
    HW = H * W
    inv_hw = 1.0 / HW
    use_mxu = C >= 256

    itemsize = jnp.dtype(x.dtype).itemsize
    weight_bytes = (w1.size + w2.size) * jnp.dtype(w1.dtype).itemsize

    # Generation-aware VMEM sizing.
    physical = _vmem_capacity_bytes()
    vmem_cap = max(physical - 8 * 1024 * 1024, 16 * 1024 * 1024)  # headroom
    block_budget = min(int(0.80 * physical), vmem_cap - 4 * 1024 * 1024)
    # Treat <=64 MiB VMEM as a multi-TensorCore chip (v7x): keep >=2 grid steps.
    multi_tc = physical <= 64 * 1024 * 1024

    x_flat = x.reshape(B, C, HW)
    block_bytes = C * HW * itemsize  # one batch element (input-only)

    # Double-buffered input + output blocks per grid step: 4 * bt * block.
    max_bt = block_budget // (4 * block_bytes)

    if max_bt >= 1 and not force_two_pass:
        # ---------------- single-pass path ----------------
        target = min(int(max_bt), B)
        if multi_tc and B >= 2:
            target = min(target, max(1, B // 2))
        bt = 1
        for d in range(1, target + 1):
            if B % d == 0:
                bt = d

        needed = 4 * bt * block_bytes + 2 * weight_bytes + (4 << 20)
        vmem_limit = int(min(max(needed, 32 << 20), vmem_cap))

        kernel = functools.partial(se_kernel, inv_hw=inv_hw, use_mxu=use_mxu)
        out_flat = pl.pallas_call(
            kernel,
            out_shape=jax.ShapeDtypeStruct((B, C, HW), x.dtype),
            grid_spec=pltpu.PrefetchScalarGridSpec(
                num_scalar_prefetch=0,
                grid=(B // bt,),
                in_specs=[
                    pl.BlockSpec((bt, C, HW), lambda b: (b, 0, 0)),
                    pl.BlockSpec((mid, C), lambda b: (0, 0)),
                    pl.BlockSpec((C, mid), lambda b: (0, 0)),
                ],
                out_specs=pl.BlockSpec((bt, C, HW), lambda b: (b, 0, 0)),
            ),
            compiler_params=pltpu.CompilerParams(
                dimension_semantics=("parallel",),
                vmem_limit_bytes=vmem_limit,
            ),
        )(x_flat, w1, w2)
        return out_flat.reshape(B, C, H, W)

    # ---------------- two-pass fallback (single batch element too big) -------
    hw_cap = ((HW + 127) // 128) * 128

    # Pass A: only the input block is pipelined (2x buffered).
    hw_tile_a = max(128, _round_down_mult(block_budget // (2 * C * itemsize), 128))
    hw_tile_a = min(hw_tile_a, hw_cap)
    n_hw_a = pl.cdiv(HW, hw_tile_a)
    needed_a = 2 * C * hw_tile_a * itemsize + 2 * weight_bytes + (4 << 20)
    vmem_limit_a = int(min(max(needed_a, 32 << 20), vmem_cap))

    kernel_a = functools.partial(
        pool_scale_kernel, hw=HW, hw_tile=hw_tile_a, inv_hw=inv_hw, use_mxu=use_mxu)
    scale = pl.pallas_call(
        kernel_a,
        out_shape=jax.ShapeDtypeStruct((B, 1, C), jnp.float32),
        grid_spec=pltpu.PrefetchScalarGridSpec(
            num_scalar_prefetch=0,
            grid=(B, n_hw_a),
            in_specs=[
                pl.BlockSpec((1, C, hw_tile_a), lambda b, l: (b, 0, l)),
                pl.BlockSpec((mid, C), lambda b, l: (0, 0)),
                pl.BlockSpec((C, mid), lambda b, l: (0, 0)),
            ],
            out_specs=pl.BlockSpec((1, 1, C), lambda b, l: (b, 0, 0)),
            scratch_shapes=[pltpu.VMEM((1, C), jnp.float32)],
        ),
        compiler_params=pltpu.CompilerParams(
            dimension_semantics=("parallel", "arbitrary"),
            vmem_limit_bytes=vmem_limit_a,
        ),
    )(x_flat, w1, w2)

    # Pass B: input + output blocks pipelined (4x buffered).
    hw_tile_b = max(128, _round_down_mult(block_budget // (4 * C * itemsize), 128))
    hw_tile_b = min(hw_tile_b, hw_cap)
    n_hw_b = pl.cdiv(HW, hw_tile_b)
    needed_b = 4 * C * hw_tile_b * itemsize + 4 * C * 4 + (4 << 20)
    vmem_limit_b = int(min(max(needed_b, 32 << 20), vmem_cap))

    out_flat = pl.pallas_call(
        apply_scale_kernel,
        out_shape=jax.ShapeDtypeStruct((B, C, HW), x.dtype),
        grid_spec=pltpu.PrefetchScalarGridSpec(
            num_scalar_prefetch=0,
            grid=(B, n_hw_b),
            in_specs=[
                pl.BlockSpec((1, 1, C), lambda b, l: (b, 0, 0)),
                pl.BlockSpec((1, C, hw_tile_b), lambda b, l: (b, 0, l)),
            ],
            out_specs=pl.BlockSpec((1, C, hw_tile_b), lambda b, l: (b, 0, l)),
        ),
        compiler_params=pltpu.CompilerParams(
            dimension_semantics=("parallel", "parallel"),
            vmem_limit_bytes=vmem_limit_b,
        ),
    )(scale, x_flat)

    return out_flat.reshape(B, C, H, W)


# ----------------------------------------------------------------------------
# Pure-JAX reference (matches the PyTorch module semantics).
# ----------------------------------------------------------------------------
def spatial_attention_ref(x, w1, w2):
    pooled = jnp.mean(x, axis=(2, 3))              # (B, C)
    hidden = jnp.maximum(pooled @ w1.T, 0.0)       # (B, mid)
    scale = jax.nn.sigmoid(hidden @ w2.T)          # (B, C)
    return scale[:, :, None, None] * x


if __name__ == "__main__":
    reduction_ratio = 16
    key = jax.random.PRNGKey(0)
    kx, k1, k2, kx2 = jax.random.split(key, 4)

    # Shapes consistent with the module (C divisible by reduction_ratio).
    B, C, H, W = 2, 32, 16, 16
    mid = C // reduction_ratio
    x = jax.random.normal(kx, (B, C, H, W), dtype=jnp.float32)
    # Conv2d 1x1 (bias=False) weights, squeezed:
    #   fc1.weight: (mid, C, 1, 1) -> (mid, C);  fc2.weight: (C, mid, 1, 1) -> (C, mid)
    w1 = jax.random.normal(k1, (mid, C), dtype=jnp.float32) * (1.0 / jnp.sqrt(C))
    w2 = jax.random.normal(k2, (C, mid), dtype=jnp.float32) * (1.0 / jnp.sqrt(mid))

    # Case 1: HW multiple of 128, single-pass path.
    out = jax.block_until_ready(spatial_attention(x, w1, w2))
    ref = spatial_attention_ref(x, w1, w2)
    assert out.shape == (B, C, H, W)
    assert jnp.allclose(out, ref, atol=1e-5, rtol=1e-5), "mismatch (single-pass, 16x16)"

    # Case 2: HW not a multiple of 128 — full-extent (unpadded) block path.
    H2, W2 = 10, 10
    x2 = jax.random.normal(kx2, (B, C, H2, W2), dtype=jnp.float32)
    out2 = jax.block_until_ready(spatial_attention(x2, w1, w2))
    ref2 = spatial_attention_ref(x2, w1, w2)
    assert out2.shape == (B, C, H2, W2)
    assert jnp.allclose(out2, ref2, atol=1e-5, rtol=1e-5), "mismatch (single-pass, 10x10)"

    # Case 3: exercise the two-pass fallback (used when one batch element's
    # blocks exceed the VMEM budget) on small shapes by forcing it.
    out3 = jax.block_until_ready(spatial_attention(x, w1, w2, force_two_pass=True))
    assert jnp.allclose(out3, ref, atol=1e-5, rtol=1e-5), "mismatch (two-pass fallback)"

    print("KERNEL_OK")
</pallas_src>

<mosaic_0001>
module attributes {stable_mosaic.version = 11 : i64} {
  func.func @se_kernel(%arg0: i32, %arg1: memref<1x32x256xf32, #tpu.memory_space<vmem>>, %arg2: memref<2x32xf32, #tpu.memory_space<vmem>>, %arg3: memref<32x2xf32, #tpu.memory_space<vmem>>, %arg4: memref<1x32x256xf32, #tpu.memory_space<vmem>>) attributes {dimension_semantics = [#tpu.dimension_semantics<parallel>], iteration_bounds = array<i64: 2>, scalar_prefetch = 0 : i64, scratch_operands = 0 : i64, tpu.core_type = #tpu.core_type<tc>, window_params = [{transform_indices = @transform_0, window_bounds = array<i64: 1, 32, 256>}, {pipeline_mode = #tpu.pipeline_mode<synchronous>, transform_indices = @transform_1, window_bounds = array<i64: 2, 32>}, {pipeline_mode = #tpu.pipeline_mode<synchronous>, transform_indices = @transform_2, window_bounds = array<i64: 32, 2>}, {transform_indices = @transform_3, window_bounds = array<i64: 1, 32, 256>}]} {
    %c0 = arith.constant 0 : index
    %c0_0 = arith.constant 0 : index
    %c0_1 = arith.constant 0 : index
    %0 = vector.load %arg1[%c0, %c0_0, %c0_1] : memref<1x32x256xf32, #tpu.memory_space<vmem>>, vector<1x32x256xf32>
    %cst = arith.constant dense<0.000000e+00> : vector<1x32xf32>
    %1 = vector.multi_reduction <add>, %0, %cst [2] : vector<1x32x256xf32> to vector<1x32xf32>
    %cst_2 = arith.constant 3.906250e-03 : f32
    %2 = vector.broadcast %cst_2 : f32 to vector<1x32xf32>
    %3 = arith.mulf %1, %2 : vector<1x32xf32>
    %c0_3 = arith.constant 0 : index
    %c0_4 = arith.constant 0 : index
    %4 = vector.load %arg2[%c0_3, %c0_4] : memref<2x32xf32, #tpu.memory_space<vmem>>, vector<2x32xf32>
    %c0_5 = arith.constant 0 : index
    %c0_6 = arith.constant 0 : index
    %5 = vector.load %arg3[%c0_5, %c0_6] : memref<32x2xf32, #tpu.memory_space<vmem>>, vector<32x2xf32>
    %6 = vector.shape_cast %3 : vector<1x32xf32> to vector<1x1x32xf32>
    %7 = vector.shape_cast %4 : vector<2x32xf32> to vector<1x2x32xf32>
    %8 = vector.broadcast %6 : vector<1x1x32xf32> to vector<1x2x32xf32>
    %9 = arith.mulf %8, %7 : vector<1x2x32xf32>
    %cst_7 = arith.constant dense<0.000000e+00> : vector<1x2xf32>
    %10 = vector.multi_reduction <add>, %9, %cst_7 [2] : vector<1x2x32xf32> to vector<1x2xf32>
    %cst_8 = arith.constant 0.000000e+00 : f32
    %11 = vector.broadcast %cst_8 : f32 to vector<1x2xf32>
    %12 = arith.maximumf %10, %11 : vector<1x2xf32>
    %13 = vector.shape_cast %12 : vector<1x2xf32> to vector<1x1x2xf32>
    %14 = vector.shape_cast %5 : vector<32x2xf32> to vector<1x32x2xf32>
    %15 = vector.broadcast %13 : vector<1x1x2xf32> to vector<1x32x2xf32>
    %16 = arith.mulf %15, %14 : vector<1x32x2xf32>
    %cst_9 = arith.constant dense<0.000000e+00> : vector<1x32xf32>
    %17 = vector.multi_reduction <add>, %16, %cst_9 [2] : vector<1x32x2xf32> to vector<1x32xf32>
    %18 = arith.negf %17 : vector<1x32xf32>
    %19 = math.exp %18 : vector<1x32xf32>
    %cst_10 = arith.constant 1.000000e+00 : f32
    %20 = vector.broadcast %cst_10 : f32 to vector<1x32xf32>
    %21 = arith.addf %20, %19 : vector<1x32xf32>
    %22 = arith.divf %20, %21 : vector<1x32xf32>
    %c0_11 = arith.constant 0 : index
    %c0_12 = arith.constant 0 : index
    %c0_13 = arith.constant 0 : index
    %23 = vector.load %arg1[%c0_11, %c0_12, %c0_13] : memref<1x32x256xf32, #tpu.memory_space<vmem>>, vector<1x32x256xf32>
    %24 = vector.shape_cast %22 : vector<1x32xf32> to vector<1x32x1xf32>
    %25 = vector.broadcast %24 : vector<1x32x1xf32> to vector<1x32x256xf32>
    %26 = arith.mulf %23, %25 : vector<1x32x256xf32>
    %c0_14 = arith.constant 0 : index
    %c0_15 = arith.constant 0 : index
    %c0_16 = arith.constant 0 : index
    %27 = vector.load %arg4[%c0_14, %c0_15, %c0_16] : memref<1x32x256xf32, #tpu.memory_space<vmem>>, vector<1x32x256xf32>
    tpu.vector_store %arg4[%c0_14, %c0_15, %c0_16], %26 {strides = array<i32>} : memref<1x32x256xf32, #tpu.memory_space<vmem>>, vector<1x32x256xf32>,
    return
  }
  func.func @transform_0(%arg0: i32) -> (i32, i32, i32) {
    %c0_i32 = arith.constant 0 : i32
    %c0_i32_0 = arith.constant 0 : i32
    %c0_i32_1 = arith.constant 0 : i32
    return %arg0, %c0_i32, %c0_i32_0 : i32, i32, i32
  }
  func.func @transform_1(%arg0: i32) -> (i32, i32) {
    %c0_i32 = arith.constant 0 : i32
    %c0_i32_0 = arith.constant 0 : i32
    %c0_i32_1 = arith.constant 0 : i32
    return %c0_i32, %c0_i32_0 : i32, i32
  }
  func.func @transform_2(%arg0: i32) -> (i32, i32) {
    %c0_i32 = arith.constant 0 : i32
    %c0_i32_0 = arith.constant 0 : i32
    %c0_i32_1 = arith.constant 0 : i32
    return %c0_i32, %c0_i32_0 : i32, i32
  }
  func.func @transform_3(%arg0: i32) -> (i32, i32, i32) {
    %c0_i32 = arith.constant 0 : i32
    %c0_i32_0 = arith.constant 0 : i32
    %c0_i32_1 = arith.constant 0 : i32
    return %arg0, %c0_i32, %c0_i32_0 : i32, i32, i32
  }
}

</mosaic_0001>

<bundles_post_ra>
// kernel: tpu_custom_call.1
= control target key start
LH: loop header
LB: loop body
LE: loop exit
PB: predicated region body
PF: predicated region fallthrough
CT: control target
= control target key end

     0   :  { %8 = vsyncpa [#allocation3], 0  ;;  %s1688_s0 = inlined_call_operand.hbm [shape: f32[2,32,256], index: 0, kind: input, shape index: {}]   ;;  %s1689_s1 = inlined_call_operand.vmem [shape: f32[2,32], index: 1, kind: input, shape index: {}]   ;;  %s1690_s2 = inlined_call_operand.vmem [shape: f32[32,2], index: 2, kind: input, shape index: {}]   ;;  %s1691_s3 = inlined_call_operand.hbm [shape: f32[2,32,256], index: 3, kind: output, shape index: {}]  }
   0x1   :  { %10 = vsyncpa [#allocation3 + $0x1], 0 }
   0x2   :  { %11 = vsyncpa [#allocation4], 0 }
   0x3   :  { %13 = vsyncpa [#allocation4 + $0x1], 0  ;;  %s1299_s12 = smov 0   ;;  %s1301_s13 = smov 0  }
   0x4   :  { %s1303_s14 = smov 0   ;;  %s1305_s15 = smov 0  }
   0x5 LB: > { %s1320_s16 = sadd.s32 4294967295, %s1270_s15   ;;  %s1085_s17 = sadd.s32 4294967294, %s1270_s15   ;;  %s1270_s15 = sphi %s1305_s15, %s1704_s15   ;;  %s1266_s14 = sphi %s1303_s14, %s1703_s14   ;;  %s1262_s13 = sphi %s1301_s13, %s1702_s13   ;;  %s1258_s12 = sphi %s1299_s12, %s1701_s12  }
   0x6   : > { %s1324_s18 = sadd.s32 1, %s1270_s15   ;;  %s26_s19 = sadd.s32 1, %s1266_s14 }
   0x7   : > { %s23_s20 = ssub.s32 %s1270_s15, %s1324_s18  ;;  %p33_p0 = scmp.ne.s32.totalorder %s1266_s14, %s1262_s13 }
   0x8   : > { %p24_p1 = scmp.eq.s32.totalorder %s23_s20, 0  ;;  %p34_p2 = scmp.eq.s32.totalorder %s1270_s15, 0 }
   0x9   : > { %p39_p3 = scmp.ne.s32.totalorder %s1262_s13, %s1258_s12  ;;  %p40_p4 = scmp.eq.s32.totalorder %s1320_s16, 0 }
   0xa   : > { %s1336_s21 = scalar_select %p24_p1, %s1266_s14, %s26_s19  }
   0xb   : > { %p1338_p5 = por %p34_p2, %p33_p0  ;;  %p1342_p6 = por %p40_p4, %p39_p3 }
   0xc   : > { %p105_p7 = scmp.eq.s32.totalorder %s1320_s16, 1  ;;  %p111_p8 = scmp.eq.s32.totalorder %s1085_s17, 1 }
   0xd   : > { %p1117_p10 = scmp.lt.s32.totalorder %s1270_s15, 2  ;;  %s137_s26 = sand.u32 1, %s1266_s14  }
   0xe   : > { %p1349_p11 = por %p105_p7, %p33_p0  ;;  %p1353_p12 = por %p111_p8, %p39_p3 }
   0xf   : > { %s1103_s27 = sshll.u32 %s1270_s15, 10  ;;  %s1088_s28 = sshll.u32 %s137_s26, 6 }
  0x10   : > { %s1695_s24 = scalar_select %p1349_p11, 1, 0 }
  0x11   : > { %s1696_s25 = scalar_select %p1353_p12, 1, 0 }
  0x12   : > { %s1362_s4 = scalar_lea.hbm %s1688_s0, %s1103_s27  ;;  %s141_s5 = scalar_lea.vmem [#allocation2], %s1088_s28 }
  0x13   : > { %s148_s6 = sshll.u32 %s141_s5, 4  ;;  %p1366_p13 = pnand %p1117_p10, %p1338_p5  ;;  %s1370_s6 = int_to_ptr.vmem [resolvable:$true] %s148_s6 }
  0x14   : > { %s1372_s8 = scalar_lea.sflag [#allocation3], %s137_s26  ;;  %s1174_s9 = scalar_lea.hbm %s1362_s4, 1024 }
  0x15   : > { %p1175_p0 = scmp.ne.s32.totalorder %s1362_s4, %s1174_s9  ;;  %p1176_p1 = pneg %p1366_p13 }
  0x16   : > { %s1179_s17 = scalar_lea.hbm %s1688_s0, 2048  ;;  %p1180_p4 = scmp.lt.u32.totalorder %s1362_s4, %s1688_s0 }
  0x17   : > { %p1177_p2 = pnand %p1176_p1, %p1175_p0  ;;  %p1181_p5 = scmp.lt.u32.totalorder %s1179_s17, %s1174_s9 }
  0x18   : > { %p1183_p8 = scmp.lt.u32.totalorder %s1174_s9, %s1362_s4 }
  0x19   : > { %p1178_p3 = pneg %p1177_p2  ;;  %p1182_p7 = por %p1181_p5, %p1180_p4 }
  0x1b   : > { %p1184_p10 = por %p1183_p8, %p1182_p7 }
  0x1d   : > { %p1185_p9 = pnand %p1184_p10, %p1178_p3 }
  0x1f   : > { %1188 = shalt.err (!%p1185_p9)
}
  0x20   : > { %s1189_s22 = scalar_lea.vmem %s1370_s6, 1024  ;;  %s1272_s26 = smov [#allocation2]  }
  0x21   : > { %p1190_p0 = scmp.ne.s32.totalorder %s1370_s6, %s1189_s22  ;;  %s1194_s27 = sshll.u32 %s1272_s26, 4  ;;  %s1195_s27 = int_to_ptr.vmem [resolvable:$false] %s1194_s27 }
  0x22   : > { %s1196_s28 = scalar_lea.vmem %s1195_s27, 2048  ;;  %p1197_p11 = scmp.lt.s32.totalorder %s1370_s6, %s1195_s27 }
  0x23   : > { %p1192_p2 = pnand %p1190_p0, %p1176_p1  ;;  %p1198_p4 = scmp.lt.s32.totalorder %s1196_s28, %s1189_s22 }
  0x25   : > { %p1193_p12 = pneg %p1192_p2  ;;  %p1199_p5 = por %p1198_p4, %p1197_p11 }
  0x27   : > { %p1200_p7 = pnand %p1199_p5, %p1193_p12 }
  0x29   : > { %1203 = shalt.err (!%p1200_p7)
}
  0x2a   : > { %s1273_s29 = smov 256   ;;  %s1274_s30 = smov 16  }
  0x2b   : > { %1112 = dma.hbm_to_vmem [thread:$0]  (!%p1366_p13), %s1362_s4, 1024, %s1370_s6, %s1372_s8, %s1273_s29, %s1273_s29, %s1274_s30  }
  0x2c   : > { %p1091_p9 = scmp.ge.s32.totalorder %s1270_s15, 1  ;;  %p156_p1 = scmp.lt.s32.totalorder %s1270_s15, 3 }
  0x2e   : > { %p157_p3 = pnand %p1091_p9, %p156_p1 }
  0x2f   : > { %s1403_s5 = sand.u32 (!%p157_p3), 1, %s1262_s13  }
  0x30   : > { %160 = sbr.rel (%p157_p3) target bundleno = 887 (0x377), region = 32  ;;  %s1092_s9 = sshll.u32 (!%p157_p3), %s1403_s5, 6 }
  0x31   : > { %s163_s10 = scalar_lea.sflag (!%p157_p3), [#allocation3], %s1403_s5  ;;  %s166_s11 = scalar_lea.vmem (!%p157_p3), [#allocation2], %s1092_s9 }
  0x37   : > { %1249 = dma.done.wait (%p1342_p6), %s163_s10, 1024  }
  0x38   : > { %1251 = vsyncadd (%p1342_p6), %s163_s10, 4294966272  ;;  %v1413_v0 = vld [vmem:[%s166_s11 + $0x20] sm:$0xff]  ;;  %v1415_v1 = vld [vmem:[%s166_s11 + $0x28] sm:$0xff]  ;;  %v219_v12 = vlaneseq  ;;  %v1275_v19 = vmov 0   ;;  %vm316_vm0 = vcmask 130112   ;;  %vm323_vm1 = vcmask 195712  }
  0x39   : > { %v1417_v2 = vld [vmem:[%s166_s11] sm:$0xff]  ;;  %v203_v3 = vadd.f32 %v1415_v1, %v1413_v0  ;;  %v1421_v4 = vld [vmem:[%s166_s11 + $0x8] sm:$0xff]  ;;  %v1423_v5 = vld [vmem:[%s166_s11 + $0x30] sm:$0xff]  ;;  %1157 = vset.pattern.permute.xlu1 %v1275_v19  ;;  %1156 = vset.pattern.permute.xlu0 %v1275_v19  ;;  %vm330_vm2 = vcmask 261312   ;;  %vm351_vm3 = vcmask 1041409   ;;  %vm354_vm4 = vcmask 254976  }
  0x3a   : > { %v1425_v6 = vld [vmem:[%s166_s11 + $0x38] sm:$0xff]  ;;  %v197_v7 = vadd.f32 %v1421_v4, %v1417_v2  ;;  %v1429_v8 = vld [vmem:[%s166_s11 + $0x10] sm:$0xff]  ;;  %v1438_v13 = vshrl.u32 %v219_v12, 7  ;;  %v213_v15 = vld [vmem:[%s1689_s1] sm:$0x3]  ;;  %vm908_vm5 = vcmask 1042434  }
  0x3b   : > { %v1431_v9 = vld [vmem:[%s166_s11 + $0x18] sm:$0xff]  ;;  %204 = vadd.xlane.f32.xlu1 %v203_v3  ;;  %v206_v10 = vadd.f32 %v1425_v6, %v1423_v5  ;;  %v215_v41 = vld [vmem:[%s1690_s2 + $0x8] sm:$0xff]  ;;  %v1462_v48 = vld [vmem:[%s1690_s2] sm:$0xff]  ;;  %vm910_vm6 = vcmask 1043459   ;;  %vm912_vm7 = vcmask 1044484   ;;  %vm914_vm8 = vcmask 1045509  }
  0x3c   : > { %198 = vadd.xlane.f32.xlu0 %v197_v7  ;;  %v200_v11 = vadd.f32 %v1431_v9, %v1429_v8  ;;  %v1441_v14 = vsub.s32 0, %v1438_v13  ;;  %v1448_v17 = vsub.s32 1, %v1438_v13  ;;  %v379_v39 = vsub.s32 2, %v1438_v13  ;;  %v217_v47 = vld [vmem:[%s1690_s2 + $0x18] sm:$0xff]  ;;  %v216_v60 = vld [vmem:[%s1690_s2 + $0x10] sm:$0xff]  ;;  %s188_s27 = scalar_lea.vmem [#allocation5], %s1092_s9 }
  0x3d   : > { %v386_v45 = vsub.s32 3, %v1438_v13  ;;  %v393_v51 = vsub.s32 4, %v1438_v13  ;;  %v400_v56 = vsub.s32 5, %v1438_v13  ;;  %v407_v62 = vsub.s32 6, %v1438_v13  ;;  %s1104_s28 = sshll.u32 %s1320_s16, 10  ;;  %s1012_s29 = sshll.u32 %s188_s27, 4  ;;  %s1642_s29 = int_to_ptr.vmem [resolvable:$true] %s1012_s29 }
  0x3e   : > { %v222_v16 = vrot.slane %v213_v15, %v1441_v14  ;;  %v241_v18 = vrot.slane %v213_v15, %v1448_v17  ;;  %v436_v44 = vrot.slane %v215_v41, %v379_v39  ;;  %v366_v52 = vrot.slane %v1462_v48, %v1441_v14  ;;  %s1640_s9 = scalar_lea.hbm %s1691_s3, %s1104_s28  ;;  %s999_s16 = scalar_lea.sflag [#allocation4], %s1403_s5 }
  0x3f   : > { %207 = vadd.xlane.f32.xlu1 %v206_v10  ;;  %v555_v50 = vrot.slane %v217_v47, %v386_v45  ;;  %v450_v53 = vrot.slane %v215_v41, %v393_v51  ;;  %v373_v54 = vrot.slane %v1462_v48, %v1448_v17  ;;  %v562_v55 = vrot.slane %v217_v47, %v393_v51  ;;  %s1204_s11 = scalar_lea.vmem %s1642_s29, 1024  ;;  %p1698_p11 = scmp.ne.s32.totalorder %s1695_s24, 0 }
  0x40   : > { %201 = vadd.xlane.f32.xlu0 %v200_v11  ;;  %v422_v57 = vrot.slane %v215_v41, %v1441_v14  ;;  %v457_v58 = vrot.slane %v215_v41, %v400_v56  ;;  %v429_v59 = vrot.slane %v215_v41, %v1448_v17  ;;  %v569_v61 = vrot.slane %v217_v47, %v400_v56  ;;  %p1205_p6 = scmp.ne.s32.totalorder %s1642_s29, %s1204_s11  ;;  %s1276_s23 = smov [#allocation5]  }
  0x41   : > { %v478_v63 = vrot.slane %v216_v60, %v1441_v14  ;;  %v464_v3 = vrot.slane %v215_v41, %v407_v62  ;;  %v485_v7 = vrot.slane %v216_v60, %v1448_v17  ;;  %v576_v10 = vrot.slane %v217_v47, %v407_v62  ;;  %s1208_s4 = sshll.u32 %s1276_s23, 4  ;;  %s1209_s4 = int_to_ptr.vmem [resolvable:$false] %s1208_s4 }
  0x42   : > { %v414_v11 = vsub.s32 7, %v1438_v13  ;;  %v534_v15 = vrot.slane %v217_v47, %v1441_v14  ;;  %v443_v14 = vrot.slane %v215_v41, %v386_v45  ;;  %vm916_vm9 = vcmask 1046534   ;;  %p1206_p12 = pnand %p1205_p6, %p1698_p11  ;;  %s1210_s6 = scalar_lea.vmem %s1209_s4, 2048 }
  0x43   : > { %vm918_vm10 = vcmask 1047559   ;;  %vm945_vm11 = vcmask 15360   ;;  %p1211_p8 = scmp.lt.s32.totalorder %s1642_s29, %s1209_s4  ;;  %p1212_p10 = scmp.lt.s32.totalorder %s1210_s6, %s1204_s11 }
  0x44   : > { %v583_v19 = vrot.slane %v217_v47, %v414_v11  ;;  %p1207_p13 = pneg %p1206_p12 }
  0x45   : > { %p1213_p0 = por %p1212_p10, %p1211_p8 }
  0x47   : > { %p1214_p2 = pnand %p1213_p0, %p1207_p13 }
  0x50   : > { %228 = vbcast.lane.b32.xlu1 %v222_v16, 264 }
  0x54   : > { %243 = vbcast.lane.b32.xlu1 %v241_v18, 256 }
  0x56   : > { %224 = vbcast.lane.b32.xlu0 %v222_v16, 256 }
  0x58   : > { %247 = vbcast.lane.b32.xlu1 %v241_v18, 264 }
  0x5a   : > { %232 = vbcast.lane.b32.xlu0 %v222_v16, 272 }
  0x5c   : > { %251 = vbcast.lane.b32.xlu1 %v241_v18, 272 }
  0x5e   : > { %236 = vbcast.lane.b32.xlu0 %v222_v16, 280  ;;  %v471_v16 = vrot.slane %v215_v41, %v414_v11 }
  0x60   : > { %255 = vbcast.lane.b32.xlu1 %v241_v18, 280  ;;  %v541_v18 = vrot.slane %v217_v47, %v1448_v17  ;;  %v394_v17 = vrot.slane %v1462_v48, %v393_v51 }
  0xc8   : > { %v205_v20 = vpop.xlane.xlu1 %204 }
  0xc9   : > { %v199_v21 = vpop.xlane.xlu0 %198  ;;  %v211_v33 = vmul.f32 0.00390625, %v205_v20  ;;  %v380_v20 = vrot.slane %v1462_v48, %v379_v39 }
  0xca   : > { %v209_v25 = vmul.f32 0.00390625, %v199_v21  ;;  %v492_v21 = vrot.slane %v216_v60, %v379_v39 }
  0xcc   : > { %v208_v22 = vpop.xlane.xlu1 %207 }
  0xcd   : > { %v202_v23 = vpop.xlane.xlu0 %201  ;;  %v212_v38 = vmul.f32 0.00390625, %v208_v22  ;;  %v548_v22 = vrot.slane %v217_v47, %v379_v39 }
  0xce   : > { %v210_v24 = vmul.f32 0.00390625, %v202_v23  ;;  %v387_v23 = vrot.slane %v1462_v48, %v386_v45 }
  0xd0   : > { %v229_v26 = vpop.permute.xlu1 %228 }
  0xd1   : > { %v266_v27 = vmul.f32 %v229_v26, %v210_v24  ;;  %v225_v28 = vpop.permute.xlu0 %224  ;;  %v401_v26 = vrot.slane %v1462_v48, %v400_v56 }
  0xd2   : > { %v265_v29 = vmul.f32 %v225_v28, %v209_v25  ;;  %v408_v28 = vrot.slane %v1462_v48, %v407_v62 }
  0xd3   : > { %285 = vperm.xlu1 %1157, %v266_v27   ;;  %v513_v27 = vrot.slane %v216_v60, %v400_v56 }
  0xd4   : > { %282 = vperm.xlu0 %1156, %v265_v29   ;;  %v244_v30 = vpop.permute.xlu1 %243  ;;  %v520_v29 = vrot.slane %v216_v60, %v407_v62 }
  0xd5   : > { %v269_v31 = vmul.f32 %v244_v30, %v209_v25  ;;  %v233_v32 = vpop.permute.xlu0 %232  ;;  %v506_v25 = vrot.slane %v216_v60, %v393_v51  ;;  %v415_v30 = vrot.slane %v1462_v48, %v414_v11 }
  0xd6   : > { %v267_v35 = vmul.f32 %v233_v32, %v211_v33 }
  0xd7   : > { %294 = vperm.xlu1 %1157, %v269_v31   ;;  %v527_v31 = vrot.slane %v216_v60, %v414_v11 }
  0xd8   : > { %v248_v34 = vpop.permute.xlu1 %247 }
  0xd9   : > { %v270_v36 = vmul.f32 %v248_v34, %v210_v24  ;;  %v237_v37 = vpop.permute.xlu0 %236  ;;  %v499_v24 = vrot.slane %v216_v60, %v386_v45 }
  0xda   : > { %v268_v42 = vmul.f32 %v237_v37, %v212_v38 }
  0xdb   : > { %297 = vperm.xlu0 %1156, %v270_v36   ;;  %288 = vperm.xlu1 %1157, %v267_v35  }
  0xdc   : > { %v252_v40 = vpop.permute.xlu1 %251 }
  0xdd   : > { %v271_v43 = vmul.f32 %v252_v40, %v211_v33  ;;  %v306_v33 = vand.u32 127, %v219_v12 }
  0xdf   : > { %300 = vperm.xlu0 %1156, %v271_v43   ;;  %291 = vperm.xlu1 %1157, %v268_v42   ;;  %v311_v36 = vadd.s32 4294967288, %v306_v33  ;;  %v318_v37 = vadd.s32 4294967280, %v306_v33  ;;  %v1489_v41 = vsub.s32 %v306_v33, %v1438_v13 }
  0xe0   : > { %v256_v46 = vpop.permute.xlu1 %255 }
  0xe1   : > { %v272_v49 = vmul.f32 %v256_v46, %v212_v38  ;;  %v325_v38 = vadd.s32 4294967272, %v306_v33  ;;  %v314_v42 = vsub.s32 %v311_v36, %v1438_v13  ;;  %v321_v43 = vsub.s32 %v318_v37, %v1438_v13 }
  0xe3   : > { %303 = vperm.xlu0 %1156, %v272_v49   ;;  %438 = vbcast.lane.b32.xlu1 %v436_v44, 256  ;;  %v328_v44 = vsub.s32 %v325_v38, %v1438_v13 }
  0xe7   : > { %557 = vbcast.lane.b32.xlu1 %v555_v50, 256  ;;  %368 = vbcast.lane.b32.xlu0 %v366_v52, 256 }
  0xeb   : > { %452 = vbcast.lane.b32.xlu1 %v450_v53, 256  ;;  %375 = vbcast.lane.b32.xlu0 %v373_v54, 256 }
  0xef   : > { %564 = vbcast.lane.b32.xlu1 %v562_v55, 256  ;;  %424 = vbcast.lane.b32.xlu0 %v422_v57, 256 }
  0xf3   : > { %459 = vbcast.lane.b32.xlu1 %v457_v58, 256  ;;  %431 = vbcast.lane.b32.xlu0 %v429_v59, 256 }
  0xf7   : > { %571 = vbcast.lane.b32.xlu1 %v569_v61, 256  ;;  %480 = vbcast.lane.b32.xlu0 %v478_v63, 256 }
  0xfb   : > { %466 = vbcast.lane.b32.xlu1 %v464_v3, 256  ;;  %487 = vbcast.lane.b32.xlu0 %v485_v7, 256 }
  0xff   : > { %578 = vbcast.lane.b32.xlu1 %v576_v10, 256  ;;  %536 = vbcast.lane.b32.xlu0 %v534_v15, 256 }
 0x103   : > { %473 = vbcast.lane.b32.xlu1 %v471_v16, 256  ;;  %543 = vbcast.lane.b32.xlu0 %v541_v18, 256 }
 0x107   : > { %585 = vbcast.lane.b32.xlu1 %v583_v19, 256  ;;  %382 = vbcast.lane.b32.xlu0 %v380_v20, 256 }
 0x10b   : > { %494 = vbcast.lane.b32.xlu0 %v492_v21, 256 }
 0x10f   : > { %550 = vbcast.lane.b32.xlu0 %v548_v22, 256 }
 0x113   : > { %389 = vbcast.lane.b32.xlu0 %v387_v23, 256 }
 0x117   : > { %445 = vbcast.lane.b32.xlu0 %v443_v14, 256 }
 0x11b   : > { %501 = vbcast.lane.b32.xlu0 %v499_v24, 256 }
 0x11f   : > { %396 = vbcast.lane.b32.xlu0 %v394_v17, 256 }
 0x123   : > { %508 = vbcast.lane.b32.xlu0 %v506_v25, 256 }
 0x127   : > { %403 = vbcast.lane.b32.xlu0 %v401_v26, 256 }
 0x12b   : > { %515 = vbcast.lane.b32.xlu0 %v513_v27, 256 }
 0x12f   : > { %410 = vbcast.lane.b32.xlu0 %v408_v28, 256 }
 0x133   : > { %522 = vbcast.lane.b32.xlu0 %v520_v29, 256 }
 0x137   : > { %417 = vbcast.lane.b32.xlu0 %v415_v30, 256 }
 0x13b   : > { %529 = vbcast.lane.b32.xlu0 %v527_v31, 256 }
 0x152   : > { %v286_v32 = vpop.permute.xlu1 %285 }
 0x153   : > { %v283_v34 = vpop.permute.xlu0 %282  ;;  %v315_v47 = vrot.slane %v286_v32, %v314_v42 }
 0x154   : > { %v310_v12 = vrot.slane %v283_v34, %v1489_v41 }
 0x156   : > { %v295_v35 = vpop.permute.xlu1 %294  ;;  %v317_v54 = vsel %vm316_vm0, %v315_v47, %v310_v12 }
 0x157   : > { %v335_v51 = vrot.slane %v295_v35, %v1489_v41 }
 0x15a   : > { %v289_v39 = vpop.permute.xlu1 %288  ;;  %v298_v40 = vpop.permute.xlu0 %297 }
 0x15b   : > { %v339_v48 = vrot.slane %v298_v40, %v314_v42  ;;  %v322_v49 = vrot.slane %v289_v39, %v321_v43 }
 0x15d   : > { %v340_v55 = vsel %vm316_vm0, %v339_v48, %v335_v51  ;;  %v324_v13 = vsel %vm323_vm1, %v322_v49, %v317_v54 }
 0x15e   : > { %v292_v45 = vpop.permute.xlu1 %291  ;;  %v301_v46 = vpop.permute.xlu0 %300 }
 0x15f   : > { %v344_v50 = vrot.slane %v301_v46, %v321_v43  ;;  %v329_v52 = vrot.slane %v292_v45, %v328_v44 }
 0x161   : > { %v345_v57 = vsel %vm323_vm1, %v344_v50, %v340_v55  ;;  %v331_v58 = vsel %vm330_vm2, %v329_v52, %v324_v13 }
 0x162   : > { %v304_v53 = vpop.permute.xlu0 %303  ;;  %v439_v3 = vpop.permute.xlu1 %438 }
 0x163   : > { %v349_v56 = vrot.slane %v304_v53, %v328_v44 }
 0x165   : > { %v350_v59 = vsel %vm330_vm2, %v349_v56, %v345_v57 }
 0x166   : > { %v352_v60 = vsel %vm351_vm3, %v350_v59, %v331_v58  ;;  %v369_v62 = vpop.permute.xlu0 %368  ;;  %v558_v10 = vpop.permute.xlu1 %557 }
 0x167   : > { %v355_v61 = vsel %vm354_vm4, %v352_v60, 0.0 }
 0x168   : > { %356 = vadd.xlane.f32.xlu1 %v355_v61 }
 0x16a   : > { %v376_v63 = vpop.permute.xlu0 %375  ;;  %v453_v15 = vpop.permute.xlu1 %452 }
 0x16e   : > { %v425_v7 = vpop.permute.xlu0 %424  ;;  %v565_v18 = vpop.permute.xlu1 %564 }
 0x172   : > { %v432_v11 = vpop.permute.xlu0 %431  ;;  %v460_v20 = vpop.permute.xlu1 %459 }
 0x176   : > { %v481_v16 = vpop.permute.xlu0 %480  ;;  %v1497_v22 = vpop.permute.xlu1 %571 }
 0x17a   : > { %v488_v19 = vpop.permute.xlu0 %487  ;;  %v1499_v14 = vpop.permute.xlu1 %466 }
 0x17e   : > { %v537_v21 = vpop.permute.xlu0 %536  ;;  %v1501_v17 = vpop.permute.xlu1 %578 }
 0x182   : > { %v544_v23 = vpop.permute.xlu0 %543  ;;  %v1503_v26 = vpop.permute.xlu1 %473 }
 0x186   : > { %v383_v24 = vpop.permute.xlu0 %382  ;;  %v1505_v28 = vpop.permute.xlu1 %585 }
 0x18a   : > { %v495_v25 = vpop.permute.xlu0 %494 }
 0x18e   : > { %v551_v27 = vpop.permute.xlu0 %550 }
 0x192   : > { %v390_v29 = vpop.permute.xlu0 %389 }
 0x196   : > { %v446_v34 = vpop.permute.xlu0 %445 }
 0x19a   : > { %v502_v38 = vpop.permute.xlu0 %501 }
 0x19e   : > { %v397_v43 = vpop.permute.xlu0 %396 }
 0x1a2   : > { %v509_v47 = vpop.permute.xlu0 %508 }
 0x1a6   : > { %v404_v50 = vpop.permute.xlu0 %403 }
 0x1aa   : > { %v516_v54 = vpop.permute.xlu0 %515 }
 0x1ae   : > { %v411_v57 = vpop.permute.xlu0 %410 }
 0x1b2   : > { %v523_v61 = vpop.permute.xlu0 %522 }
 0x1f5   : > { %v357_v30 = vpop.xlane.xlu1 %356 }
 0x1f6   : > { %v1507_v31 = vmax.f32 %v357_v30, 0.0 }
 0x1f8   : > { %v619_v32 = vmul.f32 %v369_v62, %v1507_v31  ;;  %v620_v33 = vmul.f32 %v376_v63, %v1507_v31  ;;  %v627_v35 = vmul.f32 %v425_v7, %v1507_v31  ;;  %v628_v36 = vmul.f32 %v432_v11, %v1507_v31  ;;  %v418_v7 = vpop.permute.xlu0 %417 }
 0x1f9   : > { %v635_v37 = vmul.f32 %v481_v16, %v1507_v31  ;;  %v636_v39 = vmul.f32 %v488_v19, %v1507_v31  ;;  %v643_v40 = vmul.f32 %v537_v21, %v1507_v31  ;;  %v644_v42 = vmul.f32 %v544_v23, %v1507_v31 }
 0x1fa   : > { %684 = vperm.xlu0 %1156, %v619_v32   ;;  %687 = vperm.xlu1 %1157, %v620_v33   ;;  %v621_v44 = vmul.f32 %v383_v24, %v1507_v31  ;;  %v629_v45 = vmul.f32 %v439_v3, %v1507_v31  ;;  %v637_v46 = vmul.f32 %v495_v25, %v1507_v31 }
 0x1fb   : > { %v645_v12 = vmul.f32 %v551_v27, %v1507_v31  ;;  %v622_v48 = vmul.f32 %v390_v29, %v1507_v31  ;;  %v630_v49 = vmul.f32 %v446_v34, %v1507_v31  ;;  %v638_v51 = vmul.f32 %v502_v38, %v1507_v31 }
 0x1fc   : > { %v646_v52 = vmul.f32 %v558_v10, %v1507_v31  ;;  %v623_v53 = vmul.f32 %v397_v43, %v1507_v31  ;;  %v631_v55 = vmul.f32 %v453_v15, %v1507_v31  ;;  %v639_v56 = vmul.f32 %v509_v47, %v1507_v31 }
 0x1fd   : > { %v647_v13 = vmul.f32 %v565_v18, %v1507_v31  ;;  %v624_v58 = vmul.f32 %v404_v50, %v1507_v31  ;;  %v632_v59 = vmul.f32 %v460_v20, %v1507_v31  ;;  %v640_v60 = vmul.f32 %v516_v54, %v1507_v31  ;;  %v530_v18 = vpop.permute.xlu0 %529 }
 0x1fe   : > { %708 = vperm.xlu0 %1156, %v627_v35   ;;  %711 = vperm.xlu1 %1157, %v628_v36   ;;  %v648_v62 = vmul.f32 %v1497_v22, %v1507_v31  ;;  %v625_v63 = vmul.f32 %v411_v57, %v1507_v31  ;;  %v633_v3 = vmul.f32 %v1499_v14, %v1507_v31 }
 0x1ff   : > { %v641_v10 = vmul.f32 %v523_v61, %v1507_v31  ;;  %v649_v11 = vmul.f32 %v1501_v17, %v1507_v31  ;;  %v626_v15 = vmul.f32 %v418_v7, %v1507_v31  ;;  %v634_v16 = vmul.f32 %v1503_v26, %v1507_v31 }
 0x200   : > { %v642_v19 = vmul.f32 %v530_v18, %v1507_v31  ;;  %v650_v20 = vmul.f32 %v1505_v28, %v1507_v31 }
 0x202   : > { %732 = vperm.xlu0 %1156, %v635_v37   ;;  %735 = vperm.xlu1 %1157, %v636_v39  }
 0x206   : > { %756 = vperm.xlu0 %1156, %v643_v40   ;;  %759 = vperm.xlu1 %1157, %v644_v42  }
 0x20a   : > { %690 = vperm.xlu0 %1156, %v621_v44   ;;  %714 = vperm.xlu1 %1157, %v629_v45  }
 0x20e   : > { %738 = vperm.xlu0 %1156, %v637_v46   ;;  %762 = vperm.xlu1 %1157, %v645_v12  }
 0x212   : > { %693 = vperm.xlu0 %1156, %v622_v48   ;;  %717 = vperm.xlu1 %1157, %v630_v49  }
 0x216   : > { %741 = vperm.xlu0 %1156, %v638_v51   ;;  %765 = vperm.xlu1 %1157, %v646_v52  }
 0x21a   : > { %696 = vperm.xlu0 %1156, %v623_v53   ;;  %720 = vperm.xlu1 %1157, %v631_v55  }
 0x21e   : > { %744 = vperm.xlu0 %1156, %v639_v56   ;;  %768 = vperm.xlu1 %1157, %v647_v13  }
 0x222   : > { %699 = vperm.xlu0 %1156, %v624_v58   ;;  %723 = vperm.xlu1 %1157, %v632_v59  }
 0x226   : > { %747 = vperm.xlu0 %1156, %v640_v60   ;;  %771 = vperm.xlu1 %1157, %v648_v62  }
 0x22a   : > { %702 = vperm.xlu0 %1156, %v625_v63   ;;  %726 = vperm.xlu1 %1157, %v633_v3  }
 0x22e   : > { %750 = vperm.xlu0 %1156, %v641_v10   ;;  %774 = vperm.xlu1 %1157, %v649_v11  }
 0x232   : > { %705 = vperm.xlu0 %1156, %v626_v15   ;;  %729 = vperm.xlu1 %1157, %v634_v16  }
 0x236   : > { %753 = vperm.xlu0 %1156, %v642_v19   ;;  %777 = vperm.xlu1 %1157, %v650_v20  }
 0x279   : > { %v685_v21 = vpop.permute.xlu0 %684  ;;  %v688_v22 = vpop.permute.xlu1 %687 }
 0x27a   : > { %v786_v44 = vrot.slane %v688_v22, %v1489_v41  ;;  %v782_v45 = vrot.slane %v685_v21, %v1489_v41 }
 0x27c   : > { %v907_v13 = vsel %vm351_vm3, %v786_v44, %v782_v45 }
 0x27d   : > { %v709_v23 = vpop.permute.xlu0 %708  ;;  %v712_v14 = vpop.permute.xlu1 %711 }
 0x27e   : > { %v818_v46 = vrot.slane %v712_v14, %v1489_v41  ;;  %v814_v47 = vrot.slane %v709_v23, %v1489_v41 }
 0x280   : > { %v920_v59 = vsel %vm351_vm3, %v818_v46, %v814_v47 }
 0x281   : > { %v733_v24 = vpop.permute.xlu0 %732  ;;  %v736_v17 = vpop.permute.xlu1 %735 }
 0x282   : > { %v850_v12 = vrot.slane %v736_v17, %v1489_v41  ;;  %v846_v48 = vrot.slane %v733_v24, %v1489_v41 }
 0x284   : > { %v927_v60 = vsel %vm351_vm3, %v850_v12, %v846_v48 }
 0x285   : > { %v757_v25 = vpop.permute.xlu0 %756  ;;  %v760_v27 = vpop.permute.xlu1 %759 }
 0x286   : > { %v882_v50 = vrot.slane %v760_v27, %v1489_v41  ;;  %v878_v51 = vrot.slane %v757_v25, %v1489_v41 }
 0x288   : > { %v934_v3 = vsel %vm351_vm3, %v882_v50, %v878_v51 }
 0x289   : > { %v691_v29 = vpop.permute.xlu0 %690  ;;  %v715_v26 = vpop.permute.xlu1 %714 }
 0x28a   : > { %v822_v52 = vrot.slane %v715_v26, %v1489_v41  ;;  %v790_v53 = vrot.slane %v691_v29, %v1489_v41 }
 0x28c   : > { %v921_v7 = vsel %vm908_vm5, %v822_v52, %v920_v59  ;;  %v909_v10 = vsel %vm908_vm5, %v790_v53, %v907_v13 }
 0x28d   : > { %v739_v30 = vpop.permute.xlu0 %738  ;;  %v763_v32 = vpop.permute.xlu1 %762 }
 0x28e   : > { %v886_v55 = vrot.slane %v763_v32, %v1489_v41  ;;  %v854_v56 = vrot.slane %v739_v30, %v1489_v41 }
 0x290   : > { %v935_v16 = vsel %vm908_vm5, %v886_v55, %v934_v3  ;;  %v928_v18 = vsel %vm908_vm5, %v854_v56, %v927_v60 }
 0x291   : > { %v694_v33 = vpop.permute.xlu0 %693  ;;  %v718_v34 = vpop.permute.xlu1 %717 }
 0x292   : > { %v826_v57 = vrot.slane %v718_v34, %v1489_v41  ;;  %v794_v58 = vrot.slane %v694_v33, %v1489_v41 }
 0x294   : > { %v922_v21 = vsel %vm910_vm6, %v826_v57, %v921_v7  ;;  %v911_v22 = vsel %vm910_vm6, %v794_v58, %v909_v10 }
 0x295   : > { %v1546_v35 = vpop.permute.xlu0 %741  ;;  %v1548_v36 = vpop.permute.xlu1 %765 }
 0x296   : > { %v858_v23 = vrot.slane %v1546_v35, %v1489_v41  ;;  %v890_v24 = vrot.slane %v1548_v36, %v1489_v41 }
 0x298   : > { %v936_v12 = vsel %vm910_vm6, %v890_v24, %v935_v16 }
 0x299   : > { %v697_v28 = vpop.permute.xlu0 %696  ;;  %v721_v31 = vpop.permute.xlu1 %720 }
 0x29a   : > { %v830_v61 = vrot.slane %v721_v31, %v1489_v41  ;;  %v798_v62 = vrot.slane %v697_v28, %v1489_v41 }
 0x29c   : > { %v923_v17 = vsel %vm912_vm7, %v830_v61, %v922_v21  ;;  %v913_v25 = vsel %vm912_vm7, %v798_v62, %v911_v22 }
 0x29d   : > { %v1550_v37 = vpop.permute.xlu0 %744  ;;  %v1552_v38 = vpop.permute.xlu1 %768 }
 0x29e   : > { %v862_v27 = vrot.slane %v1550_v37, %v1489_v41  ;;  %v894_v26 = vrot.slane %v1552_v38, %v1489_v41  ;;  %v929_v37 = vsel %vm910_vm6, %v858_v23, %v928_v18 }
 0x2a0   : > { %v937_v51 = vsel %vm912_vm7, %v894_v26, %v936_v12 }
 0x2a1   : > { %v700_v39 = vpop.permute.xlu0 %699  ;;  %v724_v40 = vpop.permute.xlu1 %723 }
 0x2a2   : > { %v802_v11 = vrot.slane %v700_v39, %v1489_v41  ;;  %v834_v19 = vrot.slane %v724_v40, %v1489_v41 }
 0x2a4   : > { %v915_v30 = vsel %vm914_vm8, %v802_v11, %v913_v25  ;;  %v924_v35 = vsel %vm914_vm8, %v834_v19, %v923_v17 }
 0x2a5   : > { %v1554_v42 = vpop.permute.xlu0 %747  ;;  %v1556_v43 = vpop.permute.xlu1 %771 }
 0x2a6   : > { %v866_v32 = vrot.slane %v1554_v42, %v1489_v41  ;;  %v898_v38 = vrot.slane %v1556_v43, %v1489_v41  ;;  %v930_v42 = vsel %vm912_vm7, %v862_v27, %v929_v37 }
 0x2a8   : > { %v931_v48 = vsel %vm914_vm8, %v866_v32, %v930_v42 }
 0x2a9   : > { %v703_v49 = vpop.permute.xlu0 %702  ;;  %v727_v54 = vpop.permute.xlu1 %726 }
 0x2aa   : > { %v806_v20 = vrot.slane %v703_v49, %v1489_v41  ;;  %v838_v14 = vrot.slane %v727_v54, %v1489_v41  ;;  %v938_v54 = vsel %vm914_vm8, %v898_v38, %v937_v51 }
 0x2ac   : > { %v917_v31 = vsel %vm916_vm9, %v806_v20, %v915_v30  ;;  %v925_v39 = vsel %vm916_vm9, %v838_v14, %v924_v35 }
 0x2ad   : > { %v751_v63 = vpop.permute.xlu0 %750  ;;  %v775_v15 = vpop.permute.xlu1 %774 }
 0x2ae   : > { %v870_v36 = vrot.slane %v751_v63, %v1489_v41  ;;  %v902_v44 = vrot.slane %v775_v15, %v1489_v41 }
 0x2b0   : > { %v932_v53 = vsel %vm916_vm9, %v870_v36, %v931_v48  ;;  %v939_v13 = vsel %vm916_vm9, %v902_v44, %v938_v54 }
 0x2b1   : > { %v706_v29 = vpop.permute.xlu0 %705  ;;  %v730_v33 = vpop.permute.xlu1 %729 }
 0x2b2   : > { %v810_v34 = vrot.slane %v706_v29, %v1489_v41  ;;  %v842_v28 = vrot.slane %v730_v33, %v1489_v41 }
 0x2b4   : > { %v919_v40 = vsel %vm918_vm10, %v810_v34, %v917_v31  ;;  %v926_v46 = vsel %vm918_vm10, %v842_v28, %v925_v39 }
 0x2b5   : > { %v754_v45 = vpop.permute.xlu0 %753  ;;  %v946_v47 = vsel %vm945_vm11, %v919_v40, 0.0  ;;  %v778_v49 = vpop.permute.xlu1 %777  ;;  %v949_v50 = vsel %vm945_vm11, %v926_v46, 0.0 }
 0x2b6   : > { %v874_v43 = vrot.slane %v754_v45, %v1489_v41  ;;  %947 = vadd.xlane.f32.xlu0 %v946_v47  ;;  %v906_v52 = vrot.slane %v778_v49, %v1489_v41  ;;  %950 = vadd.xlane.f32.xlu1 %v949_v50 }
 0x2b8   : > { %v933_v55 = vsel %vm918_vm10, %v874_v43, %v932_v53  ;;  %v940_v57 = vsel %vm918_vm10, %v906_v52, %v939_v13 }
 0x2b9   : > { %v952_v56 = vsel %vm945_vm11, %v933_v55, 0.0  ;;  %v955_v58 = vsel %vm945_vm11, %v940_v57, 0.0 }
 0x2ba   : > { %953 = vadd.xlane.f32.xlu0 %v952_v56 }
 0x2be   : > { %956 = vadd.xlane.f32.xlu0 %v955_v58 }
 0x343   : > { %v948_v59 = vpop.xlane.xlu0 %947  ;;  %v951_v60 = vpop.xlane.xlu1 %950 }
 0x344   : > { %v1094_v41 = vmul.f32 -1.442695, %v948_v59  ;;  %v1095_v61 = vmul.f32 -1.442695, %v951_v60 }
 0x346   : > { %1158 = vpow2.f32 %v1094_v41 }
 0x347   : > { %1160 = vpow2.f32 %v1095_v61  ;;  %v954_v62 = vpop.xlane.xlu0 %953 }
 0x348   : > { %v1096_v63 = vmul.f32 -1.442695, %v954_v62 }
 0x34a   : > { %1162 = vpow2.f32 %v1096_v63 }
 0x34b   : > { %v957_v3 = vpop.xlane.xlu0 %956 }
 0x34c   : > { %v1097_v7 = vmul.f32 -1.442695, %v957_v3 }
 0x34e   : > { %1164 = vpow2.f32 %v1097_v7 }
 0x350   : > { %v1159_v10 = vpop.eup %1158 }
 0x351   : > { %v1161_v11 = vpop.eup %1160  ;;  %v970_v15 = vadd.f32 1.0, %v1159_v10 }
 0x352   : > { %v971_v16 = vadd.f32 1.0, %v1161_v11 }
 0x353   : > { %1166 = vrcp.f32 %v970_v15 }
 0x354   : > { %v1163_v18 = vpop.eup %1162  ;;  %1168 = vrcp.f32 %v971_v16 }
 0x355   : > { %v972_v19 = vadd.f32 1.0, %v1163_v18 }
 0x357   : > { %1170 = vrcp.f32 %v972_v19 }
 0x358   : > { %v1165_v20 = vpop.eup %1164 }
 0x359   : > { %v973_v21 = vadd.f32 1.0, %v1165_v20 }
 0x35b   : > { %1172 = vrcp.f32 %v973_v21 }
 0x35d   : > { %v1167_v22 = vpop.eup %1166 }
 0x35e   : > { %v1169_v23 = vpop.eup %1168  ;;  %v982_v14 = vmul.f32 %v1167_v22, %v1417_v2  ;;  %v983_v24 = vmul.f32 %v1167_v22, %v1421_v4 }
 0x35f   : > { %v984_v17 = vmul.f32 %v1169_v23, %v1429_v8  ;;  %v985_v25 = vmul.f32 %v1169_v23, %v1431_v9 }
 0x360   : > { %990 = vst [vmem:[%s188_s27] sm:$0xff] %v982_v14  ;;  %991 = vst [vmem:[%s188_s27 + $0x8] sm:$0xff] %v983_v24 }
 0x361   : > { %v1171_v27 = vpop.eup %1170  ;;  %992 = vst [vmem:[%s188_s27 + $0x10] sm:$0xff] %v984_v17  ;;  %993 = vst [vmem:[%s188_s27 + $0x18] sm:$0xff] %v985_v25 }
 0x362   : > { %v986_v29 = vmul.f32 %v1171_v27, %v1413_v0  ;;  %v987_v26 = vmul.f32 %v1171_v27, %v1415_v1 }
 0x364   : > { %994 = vst [vmem:[%s188_s27 + $0x20] sm:$0xff] %v986_v29  ;;  %995 = vst [vmem:[%s188_s27 + $0x28] sm:$0xff] %v987_v26 }
 0x365   : > { %v1173_v2 = vpop.eup %1172 }
 0x366   : > { %v988_v0 = vmul.f32 %v1173_v2, %v1423_v5  ;;  %v989_v4 = vmul.f32 %v1173_v2, %v1425_v6 }
 0x368   : > { %996 = vst [vmem:[%s188_s27 + $0x30] sm:$0xff] %v988_v0  ;;  %997 = vst [vmem:[%s188_s27 + $0x38] sm:$0xff] %v989_v4 }
 0x369   : > { %1217 = shalt.err (!%p1214_p2)
}
 0x36a   : > { %s1218_s7 = scalar_lea.hbm %s1640_s9, 1024  ;;  %s1222_s19 = scalar_lea.hbm %s1691_s3, 2048 }
 0x36b   : > { %p1219_p4 = scmp.ne.s32.totalorder %s1640_s9, %s1218_s7  ;;  %p1223_p9 = scmp.lt.u32.totalorder %s1640_s9, %s1691_s3 }
 0x36c   : > { %p1224_p1 = scmp.lt.u32.totalorder %s1222_s19, %s1218_s7  ;;  %p1226_p6 = scmp.lt.u32.totalorder %s1218_s7, %s1640_s9 }
 0x36d   : > { %p1220_p5 = pnand %p1219_p4, %p1698_p11 }
 0x36e   : > { %p1225_p3 = por %p1224_p1, %p1223_p9 }
 0x36f   : > { %p1221_p7 = pneg %p1220_p5 }
 0x370   : > { %p1227_p12 = por %p1226_p6, %p1225_p3 }
 0x372   : > { %p1228_p13 = pnand %p1227_p12, %p1221_p7 }
 0x374   : > { %1231 = shalt.err (!%p1228_p13)
}
 0x375   : > { %s1277_s26 = smov 256   ;;  %s1278_s27 = smov 16  }
 0x376   : > { %1107 = dma.vmem_to_hbm [thread:$0]  (%p1698_p11), %s1642_s29, 1024, %s1640_s9, %s999_s16, %s1277_s26, %s1277_s26, %s1278_s27  }
 0x377 PF: > { %s1027_s28 = sand.u32 1, %s1258_s12   ;;  %p1699_p8 = scmp.ne.s32.totalorder %s1696_s25, 0 }
 0x378   : > { %p1700_p10 = scmp.ge.s32.totalorder %s1270_s15, 2  ;;  %s1028_s30 = scalar_lea.sflag [#allocation4], %s1027_s28 }
 0x37a   : > { %p1114_p0 = pnand %p1700_p10, %p1699_p8 }
 0x37c   : > { %1253 = dma.done.wait (!%p1114_p0), %s1028_s30, 1024  }
 0x37d   : > { %1255 = vsyncadd (!%p1114_p0), %s1028_s30, 4294966272  ;;  %p16_p2 = scmp.ge.s32.totalorder %s1324_s18, 4   ;;  %s1701_s12 = smov %s1262_s13 }
 0x37e   : > { %s1702_s13 = smov %s1266_s14  ;;  %s1703_s14 = smov %s1336_s21 }
 0x37f   : > { %s1704_s15 = smov %s1324_s18  ;;  %18 = sbr.rel (!%p16_p2) target bundleno = 5 (0x5), region = 77 }
 0x386   :  { %1033 = vsyncpa [#allocation3], 1 }
 0x387   :  { %1035 = vsyncpa [#allocation3 + $0x1], 1 }
 0x388   :  { %1036 = vsyncpa [#allocation4], 1 }
 0x389   :  { %1038 = vsyncpa [#allocation4 + $0x1], 1 }

</bundles_post_ra>
